<compile_context>
chip_gen: v6e
topology: v6e:2x2x1
jax: 0.10.0
libtpu: 0.0.40
codegen_flags: <defaults>
</compile_context>

<pallas_src>
import jax
import jax.numpy as jnp
from jax.experimental import pallas as pl
from jax.experimental.pallas import tpu as pltpu


def _round_up(x, m):
    return (x + m - 1) // m * m


def _pad_to(x, shape):
    pads = [(0, s - d) for d, s in zip(x.shape, shape)]
    if all(p == (0, 0) for p in pads):
        return x
    return jnp.pad(x, pads)


_HIGHEST = jax.lax.Precision.HIGHEST


def gat_kernel(x_ref, w_ref, g_ref, b_ref, o_ref):
    BB, Np, Cp = x_ref.shape
    Dp = w_ref.shape[1]

    x = x_ref[...]            # (BB, Np, Cp)
    w = w_ref[...]            # (Cp, Dp)   -- pre-transposed Linear weight
    g = g_ref[...]            # (Np, Np)
    bias = b_ref[...]         # (1, Dp)

    # h = W(inputs): one fat (BB*Np, Cp) @ (Cp, Dp) MXU matmul.  Np is a
    # multiple of 8, so the leading-dim merge/split reshape is layout-preserving.
    h = jnp.dot(
        x.reshape(BB * Np, Cp), w,
        preferred_element_type=jnp.float32,
        precision=_HIGHEST,
    ).reshape(BB, Np, Dp)

    # raw = bmm(h, h^T): contraction on the last dims of both operands
    # -> no materialized transpose of h.
    raw = jax.lax.dot_general(
        h, h,
        dimension_numbers=(((2,), (2,)), ((0,), (0,))),
        preferred_element_type=jnp.float32,
        precision=_HIGHEST,
    )                                           # (BB, Np, Np)
    scores = raw * g[None]

    # masked_fill(scores == 0, -1e16) -- exact PyTorch semantics.  Padded graph
    # columns are 0, so padded keys are masked automatically.
    scores = jnp.where(scores == 0.0, jnp.float32(-1e16), scores)

    # Numerically stable softmax with DEFERRED normalization: the per-row
    # 1/sum(e) scaling is applied after the second matmul, removing an
    # N^2-element multiply and a live N^2 temporary.  denom >= 1 always
    # (the row max contributes exp(0) = 1), so the division is safe.
    m = jnp.max(scores, axis=-1, keepdims=True)
    e = jnp.exp(scores - m)
    denom = jnp.sum(e, axis=-1, keepdims=True)          # (BB, Np, 1)

    num = jax.lax.dot_general(                           # (BB, Np, Dp)
        e, h,
        dimension_numbers=(((2,), (1,)), ((0,), (0,))),
        preferred_element_type=jnp.float32,
        precision=_HIGHEST,
    )

    out = num / denom + bias[None]                       # (1,1,Dp) broadcast
    o_ref[...] = out.astype(o_ref.dtype)


def graph_attention_layer(inputs, graph, W, b):
    """
    inputs: [B, N, C]   graph: [N, N]   W: [D, C] (torch Linear layout)   b: [D]
    returns [B, N, D]
    """
    B, N, C = inputs.shape
    D = W.shape[0]

    # Padded dims: D lane-dense (128); N lane-dense once it is large enough to
    # pay for it, otherwise sublane-aligned; C sublane-aligned.
    Np = _round_up(N, 128) if N >= 64 else _round_up(N, 8)
    Cp = _round_up(C, 8)
    Dp = _round_up(D, 128)

    # Batch block: largest divisor of B giving <= ~512 projected rows per grid
    # step (amortizes ~0.35us/step overhead) -- no batch padding, so no wasted
    # N^2 matmul/exp work on phantom batch elements.
    max_bb = max(1, 512 // Np)
    BB = 1
    for cand in range(min(B, max_bb), 0, -1):
        if B % cand == 0:
            BB = cand
            break
    grid = (B // BB,)

    x_p = _pad_to(inputs.astype(jnp.float32), (B, Np, Cp))
    g_p = _pad_to(graph.astype(jnp.float32), (Np, Np))
    w_p = _pad_to(W.astype(jnp.float32).T, (Cp, Dp))              # (Cp, Dp)
    b_p = _pad_to(b.astype(jnp.float32).reshape(1, D), (1, Dp))   # (1, Dp)

    # Rough per-step VMEM footprint: double-buffered blocks + f32 temporaries
    # (h, out, scores/e).
    per_step_bytes = 4 * (
        2 * BB * Np * Cp            # inputs blocks
        + 2 * Cp * Dp               # W^T
        + 2 * Np * Np               # graph
        + 2 * Dp                    # bias
        + 2 * BB * Np * Dp          # output blocks
        + 2 * BB * Np * Dp          # h + f32 out temporary
        + 2 * BB * Np * Np          # scores / e temporaries
    )
    compiler_kwargs = {"dimension_semantics": ("parallel",)}
    # v5e's scoped-VMEM default is 16 MiB (not 32), so raise the limit past
    # that threshold; clamp to 85% of physical VMEM (64 MiB fallback ~ v7x).
    if per_step_bytes > 16 * 1024 * 1024:
        try:
            vmem_cap = pltpu.get_tpu_info().vmem_capacity_bytes
        except Exception:
            vmem_cap = 64 * 1024 * 1024
        compiler_kwargs["vmem_limit_bytes"] = int(
            min(per_step_bytes * 1.5, 0.85 * vmem_cap))

    out_p = pl.pallas_call(
        gat_kernel,
        out_shape=jax.ShapeDtypeStruct((B, Np, Dp), inputs.dtype),
        grid_spec=pltpu.PrefetchScalarGridSpec(
            num_scalar_prefetch=0,
            grid=grid,
            in_specs=[
                pl.BlockSpec((BB, Np, Cp), lambda bb: (bb, 0, 0)),   # inputs
                pl.BlockSpec((Cp, Dp), lambda bb: (0, 0)),           # W^T
                pl.BlockSpec((Np, Np), lambda bb: (0, 0)),           # graph
                pl.BlockSpec((1, Dp), lambda bb: (0, 0)),            # bias
            ],
            out_specs=pl.BlockSpec((BB, Np, Dp), lambda bb: (bb, 0, 0)),
        ),
        compiler_params=pltpu.CompilerParams(**compiler_kwargs),
    )(x_p, w_p, g_p, b_p)

    return out_p[:, :N, :D]


def reference(inputs, graph, W, b):
    h = jnp.einsum("bnc,dc->bnd", inputs, W, precision=_HIGHEST)
    scores = jnp.einsum("bnd,bmd->bnm", h, h, precision=_HIGHEST) * graph[None]
    scores = jnp.where(scores == 0.0, -1e16, scores)
    att = jax.nn.softmax(scores, axis=2)
    return jnp.einsum("bnm,bmd->bnd", att, h, precision=_HIGHEST) + b


if __name__ == "__main__":
    B, N, in_c, out_c = 2, 8, 4, 32

    key = jax.random.PRNGKey(0)
    k_x, k_g, k_w, k_b = jax.random.split(key, 4)

    inputs = jax.random.normal(k_x, (B, N, in_c), dtype=jnp.float32)
    # binary adjacency with self-loops (some zeros so the mask matters)
    graph = (jax.random.uniform(k_g, (N, N)) > 0.5).astype(jnp.float32)
    graph = jnp.maximum(graph, jnp.eye(N, dtype=jnp.float32))

    # deterministic parameter init (nn.init.normal_ on W and b)
    W = jax.random.normal(k_w, (out_c, in_c), dtype=jnp.float32)
    b = jax.random.normal(k_b, (out_c,), dtype=jnp.float32)

    out = graph_attention_layer(inputs, graph, W, b)
    out = jax.block_until_ready(out)

    ref = reference(inputs, graph, W, b)
    assert out.shape == (B, N, out_c)
    assert jnp.allclose(out, ref, atol=2e-3, rtol=2e-3)

    print("KERNEL_OK")
</pallas_src>

<mosaic_0001>
module attributes {stable_mosaic.version = 11 : i64} {
  func.func @gat_kernel(%arg0: i32, %arg1: memref<2x8x8xf32, #tpu.memory_space<vmem>>, %arg2: memref<8x128xf32, #tpu.memory_space<vmem>>, %arg3: memref<8x8xf32, #tpu.memory_space<vmem>>, %arg4: memref<1x128xf32, #tpu.memory_space<vmem>>, %arg5: memref<2x8x128xf32, #tpu.memory_space<vmem>>) attributes {dimension_semantics = [#tpu.dimension_semantics<parallel>], iteration_bounds = array<i64: 1>, scalar_prefetch = 0 : i64, scratch_operands = 0 : i64, tpu.core_type = #tpu.core_type<tc>, window_params = [{transform_indices = @transform_0, window_bounds = array<i64: 2, 8, 8>}, {pipeline_mode = #tpu.pipeline_mode<synchronous>, transform_indices = @transform_1, window_bounds = array<i64: 8, 128>}, {pipeline_mode = #tpu.pipeline_mode<synchronous>, transform_indices = @transform_2, window_bounds = array<i64: 8, 8>}, {pipeline_mode = #tpu.pipeline_mode<synchronous>, transform_indices = @transform_3, window_bounds = array<i64: 1, 128>}, {transform_indices = @transform_4, window_bounds = array<i64: 2, 8, 128>}]} {
    %c0 = arith.constant 0 : index
    %c0_0 = arith.constant 0 : index
    %c0_1 = arith.constant 0 : index
    %0 = vector.load %arg1[%c0, %c0_0, %c0_1] : memref<2x8x8xf32, #tpu.memory_space<vmem>>, vector<2x8x8xf32>
    %c0_2 = arith.constant 0 : index
    %c0_3 = arith.constant 0 : index
    %1 = vector.load %arg2[%c0_2, %c0_3] : memref<8x128xf32, #tpu.memory_space<vmem>>, vector<8x128xf32>
    %c0_4 = arith.constant 0 : index
    %c0_5 = arith.constant 0 : index
    %2 = vector.load %arg3[%c0_4, %c0_5] : memref<8x8xf32, #tpu.memory_space<vmem>>, vector<8x8xf32>
    %c0_6 = arith.constant 0 : index
    %c0_7 = arith.constant 0 : index
    %3 = vector.load %arg4[%c0_6, %c0_7] : memref<1x128xf32, #tpu.memory_space<vmem>>, vector<1x128xf32>
    %4 = vector.shape_cast %0 : vector<2x8x8xf32> to vector<16x8xf32>
    %cst = arith.constant dense<0.000000e+00> : vector<16x128xf32>
    %5 = tpu.matmul %4, %1, %cst {dimension_numbers = #tpu.dot_dimension_numbers<[1], [0], [0], [1], [0, 0, 1, 1], [], []>, precision = #tpu.contract_precision<fp32>} : vector<16x8xf32>, vector<8x128xf32>, vector<16x128xf32> -> vector<16x128xf32>
    %6 = vector.shape_cast %5 : vector<16x128xf32> to vector<2x8x128xf32>
    %cst_8 = arith.constant dense<0.000000e+00> : vector<2x8x8xf32>
    %7 = tpu.matmul %6, %6, %cst_8 {dimension_numbers = #tpu.dot_dimension_numbers<[2], [2], [1], [1], [0, 0, 0, 1, 1, 1], [0], [0]>, precision = #tpu.contract_precision<fp32>} : vector<2x8x128xf32>, vector<2x8x128xf32>, vector<2x8x8xf32> -> vector<2x8x8xf32>
    %8 = vector.shape_cast %2 : vector<8x8xf32> to vector<1x8x8xf32>
    %9 = vector.broadcast %8 : vector<1x8x8xf32> to vector<2x8x8xf32>
    %10 = arith.mulf %7, %9 : vector<2x8x8xf32>
    %cst_9 = arith.constant 0.000000e+00 : f32
    %11 = vector.broadcast %cst_9 : f32 to vector<2x8x8xf32>
    %12 = arith.cmpf oeq, %10, %11 : vector<2x8x8xf32>
    %cst_10 = arith.constant -1.000000e+16 : f32
    %13 = vector.broadcast %cst_10 : f32 to vector<2x8x8xf32>
    %14 = arith.select %12, %13, %10 : vector<2x8x8xi1>, vector<2x8x8xf32>
    %cst_11 = arith.constant dense<0xFF800000> : vector<2x8xf32>
    %15 = vector.multi_reduction <maximumf>, %14, %cst_11 [2] : vector<2x8x8xf32> to vector<2x8xf32>
    %16 = vector.shape_cast %15 : vector<2x8xf32> to vector<2x8x1xf32>
    %17 = vector.broadcast %16 : vector<2x8x1xf32> to vector<2x8x8xf32>
    %18 = arith.subf %14, %17 : vector<2x8x8xf32>
    %19 = math.exp %18 : vector<2x8x8xf32>
    %cst_12 = arith.constant dense<0.000000e+00> : vector<2x8xf32>
    %20 = vector.multi_reduction <add>, %19, %cst_12 [2] : vector<2x8x8xf32> to vector<2x8xf32>
    %21 = vector.shape_cast %20 : vector<2x8xf32> to vector<2x8x1xf32>
    %cst_13 = arith.constant dense<0.000000e+00> : vector<2x8x128xf32>
    %22 = tpu.matmul %19, %6, %cst_13 {dimension_numbers = #tpu.dot_dimension_numbers<[2], [1], [1], [2], [0, 0, 0, 1, 1, 2], [0], [0]>, precision = #tpu.contract_precision<fp32>} : vector<2x8x8xf32>, vector<2x8x128xf32>, vector<2x8x128xf32> -> vector<2x8x128xf32>
    %23 = vector.broadcast %21 : vector<2x8x1xf32> to vector<2x8x128xf32>
    %24 = arith.divf %22, %23 : vector<2x8x128xf32>
    %25 = vector.shape_cast %3 : vector<1x128xf32> to vector<1x1x128xf32>
    %26 = vector.broadcast %25 : vector<1x1x128xf32> to vector<2x8x128xf32>
    %27 = arith.addf %24, %26 : vector<2x8x128xf32>
    %c0_14 = arith.constant 0 : index
    %c0_15 = arith.constant 0 : index
    %c0_16 = arith.constant 0 : index
    %28 = vector.load %arg5[%c0_14, %c0_15, %c0_16] : memref<2x8x128xf32, #tpu.memory_space<vmem>>, vector<2x8x128xf32>
    tpu.vector_store %arg5[%c0_14, %c0_15, %c0_16], %27 {strides = array<i32>} : memref<2x8x128xf32, #tpu.memory_space<vmem>>, vector<2x8x128xf32>,
    return
  }
  func.func @transform_0(%arg0: i32) -> (i32, i32, i32) {
    %c0_i32 = arith.constant 0 : i32
    %c0_i32_0 = arith.constant 0 : i32
    %c0_i32_1 = arith.constant 0 : i32
    return %arg0, %c0_i32, %c0_i32_0 : i32, i32, i32
  }
  func.func @transform_1(%arg0: i32) -> (i32, i32) {
    %c0_i32 = arith.constant 0 : i32
    %c0_i32_0 = arith.constant 0 : i32
    %c0_i32_1 = arith.constant 0 : i32
    return %c0_i32, %c0_i32_0 : i32, i32
  }
  func.func @transform_2(%arg0: i32) -> (i32, i32) {
    %c0_i32 = arith.constant 0 : i32
    %c0_i32_0 = arith.constant 0 : i32
    %c0_i32_1 = arith.constant 0 : i32
    return %c0_i32, %c0_i32_0 : i32, i32
  }
  func.func @transform_3(%arg0: i32) -> (i32, i32) {
    %c0_i32 = arith.constant 0 : i32
    %c0_i32_0 = arith.constant 0 : i32
    %c0_i32_1 = arith.constant 0 : i32
    return %c0_i32, %c0_i32_0 : i32, i32
  }
  func.func @transform_4(%arg0: i32) -> (i32, i32, i32) {
    %c0_i32 = arith.constant 0 : i32
    %c0_i32_0 = arith.constant 0 : i32
    %c0_i32_1 = arith.constant 0 : i32
    return %arg0, %c0_i32, %c0_i32_0 : i32, i32, i32
  }
}

</mosaic_0001>

<bundles_post_ra>
// kernel: tpu_custom_call.1
= control target key start
LH: loop header
LB: loop body
LE: loop exit
PB: predicated region body
PF: predicated region fallthrough
CT: control target
= control target key end

     0   :  { %9 = vsyncpa [#allocation3], 0  ;;  %s2910_s0 = inlined_call_operand.hbm [shape: f32[2,8,8], index: 0, kind: input, shape index: {}]   ;;  %s2911_s1 = inlined_call_operand.hbm [shape: f32[8,128], index: 1, kind: input, shape index: {}]   ;;  %s2912_s2 = inlined_call_operand.hbm [shape: f32[8,8], index: 2, kind: input, shape index: {}]   ;;  %s2913_s3 = inlined_call_operand.vmem [shape: f32[1,128], index: 3, kind: input, shape index: {}]   ;;  %s2914_s4 = inlined_call_operand.hbm [shape: f32[2,8,128], index: 4, kind: output, shape index: {}]  }
   0x1   :  { %10 = vsyncpa [#allocation6], 0 }
   0x2   :  { %11 = vsyncpa [#allocation4], 0  ;;  %s2721_s15 = smov [#allocation5]   ;;  %s2722_s17 = smov [#allocation2]  }
   0x3   :  { %s30_s16 = sshll.u32 %s2721_s15, 4  ;;  %s17_s18 = sshll.u32 %s2722_s17, 4  ;;  %s31_s16 = int_to_ptr.vmem [resolvable:$true] %s30_s16  ;;  %s18_s18 = int_to_ptr.vmem [resolvable:$true] %s17_s18 }
   0x4   :  { %s2643_s19 = scalar_lea.vmem %s31_s16, 128  ;;  %p2648_p1 = scmp.lt.s32.totalorder %s31_s16, %s31_s16 }
   0x5   :  { %p2644_p0 = scmp.ne.s32.totalorder %s31_s16, %s2643_s19  ;;  %p2649_p2 = scmp.lt.s32.totalorder %s2643_s19, %s2643_s19 }
   0x7   :  { %p2650_p3 = por %p2649_p2, %p2648_p1 }
   0x9   :  { %p2651_p4 = pnand %p2650_p3, %p2644_p0 }
   0xb   :  { %2654 = shalt.err (!%p2651_p4)
}
   0xc   :  { %33 = dma.hbm_to_vmem [thread:$0]  %s2911_s1, 128, %s31_s16, [#allocation6]  }
   0xd   :  { %s2663_s22 = scalar_lea.vmem %s18_s18, 256  ;;  %p2668_p6 = scmp.lt.s32.totalorder %s18_s18, %s18_s18 }
   0xe   :  { %p2664_p5 = scmp.ne.s32.totalorder %s18_s18, %s2663_s22  ;;  %p2669_p7 = scmp.lt.s32.totalorder %s2663_s22, %s2663_s22 }
  0x10   :  { %p2670_p8 = por %p2669_p7, %p2668_p6 }
  0x12   :  { %p2671_p9 = pnand %p2670_p8, %p2664_p5 }
  0x14   :  { %2674 = shalt.err (!%p2671_p9)
}
  0x15   :  { %s2723_s23 = smov 128   ;;  %s2724_s24 = smov 8  }
  0x16   :  { %23 = dma.hbm_to_vmem [thread:$0]  %s2910_s0, 256, %s18_s18, [#allocation3], %s2723_s23, %s2723_s23, %s2724_s24  }
  0x17   :  { %s2725_s27 = smov [#allocation7]  }
  0x18   :  { %s40_s28 = sshll.u32 %s2725_s27, 4  ;;  %s41_s28 = int_to_ptr.vmem [resolvable:$true] %s40_s28 }
  0x19   :  { %s2683_s1 = scalar_lea.vmem %s41_s28, 128  ;;  %p2688_p11 = scmp.lt.s32.totalorder %s41_s28, %s41_s28 }
  0x1a   :  { %p2684_p10 = scmp.ne.s32.totalorder %s41_s28, %s2683_s1  ;;  %p2689_p12 = scmp.lt.s32.totalorder %s2683_s1, %s2683_s1 }
  0x1c   :  { %p2690_p13 = por %p2689_p12, %p2688_p11 }
  0x1e   :  { %p2691_p0 = pnand %p2690_p13, %p2684_p10 }
  0x20   :  { %2694 = shalt.err (!%p2691_p0)
}
  0x21   :  { %43 = dma.hbm_to_vmem [thread:$0]  %s2912_s2, 128, %s41_s28, [#allocation6]  }
  0x22   :  { %2715 = dma.done.wait [#allocation3], 256  }
  0x23   :  { %2716 = vsyncadd [#allocation3], 4294967040 }
  0x24   :  { %2717 = dma.done.wait [#allocation6], 256  }
  0x25   :  { %2718 = vsyncadd [#allocation6], 4294967040  ;;  %vm60_vm0 = vcmask 64512   ;;  %v57_v0 = vld [vmem:[#allocation5] sm:$0xff]  ;;  %v55_v1 = vld [vmem:[#allocation2] sm:$0xff]  ;;  %v2726_v20 = vmov 0.0  }
  0x26   :  { %v56_v2 = vld [vmem:[#allocation2 + $0x8] sm:$0xff]  ;;  %v98_v3 = vand.u32 4294901760, %v57_v0  ;;  %v62_v4 = vsel %vm60_vm0, %v55_v1, 0  ;;  %vm2727_vm1 = vmmov 0   ;;  %s2728_s5 = smov [#allocation8]  }
  0x27   :  { %v65_v5 = vsel %vm60_vm0, %v56_v2, 0  ;;  %v133_v6 = vand.u32 4294901760, %v62_v4  ;;  %s2389_s6 = sshll.u32 %s2728_s5, 4  ;;  %s2390_s6 = int_to_ptr.vmem [resolvable:$true] %s2389_s6 }
  0x28   :  { %v143_v7 = vand.u32 4294901760, %v65_v5  ;;  %2469 = vmatprep.subr.mxu0 %v98_v3  ;;  %v185_v8 = vsub.f32 %v57_v0, %v98_v3  ;;  %p2700_p2 = scmp.lt.s32.totalorder %s2390_s6, %s2390_s6 }
  0x29   :  { %2470 = vmatpush3.msra.mxu0 %v98_v3  ;;  %v134_v9 = vsub.f32 %v62_v4, %v133_v6  ;;  %2476 = vmatprep.mubr.f32.mxu1 %v133_v6 }
  0x2a   :  { %v144_v10 = vsub.f32 %v65_v5, %v143_v7  ;;  %v186_v11 = vand.u32 4294901760, %v185_v8  ;;  %2479 = vmatprep.subr.mxu0 %v185_v8 }
  0x2b   :  { %v135_v12 = vand.u32 4294901760, %v134_v9 }
  0x2c   :  { %v145_v13 = vand.u32 4294901760, %v144_v10  ;;  %v187_v14 = vsub.f32 %v185_v8, %v186_v11 }
  0x2d   :  { %v136_v15 = vsub.f32 %v134_v9, %v135_v12 }
  0x2e   :  { %v146_v16 = vsub.f32 %v144_v10, %v145_v13  ;;  %v188_v17 = vand.u32 4294901760, %v187_v14 }
  0x2f   :  { %v137_v18 = vand.u32 4294901760, %v136_v15 }
  0x30   :  { %v147_v19 = vand.u32 4294901760, %v146_v16  ;;  %2474 = vmatprep.subr.mxu1 %v188_v17 }
  0x31   :  { %2471 = vmatprep.mubr.f32.mxu0 %v137_v18  ;;  %2475 = vmatpush3.msra.mxu1 %v188_v17 }
  0x32   :  { %2472 = vmatmul.mubr.f32.vlgmr.msra.gmra.mxu0 %v147_v19  ;;  %2477 = vmatmul.mubr.f32.vlgmr.msra.gmra.mxu1 %v143_v7 }
  0x33   :  { %2480 = vmatpush3.msra.mxu0 %v185_v8  ;;  %2484 = vmatprep.subr.mxu1 %v98_v3 }
  0x34   :  { %2481 = vmatprep.mubr.f32.mxu0 %v134_v9  ;;  %2485 = vmatpush3.msra.mxu1 %v98_v3 }
  0x35   :  { %2486 = vmatprep.mubr.f32.mxu1 %v135_v12  ;;  %2489 = vmatprep.subr.mxu0 %v186_v11 }
  0x36   :  { %2482 = vmatmul.mubr.f32.vlgmr.msra.gmra.mxu0 %v144_v10  ;;  %2487 = vmatmul.mubr.f32.vlgmr.msra.gmra.mxu1 %v145_v13 }
  0x37   :  { %2490 = vmatpush3.msra.mxu0 %v186_v11  ;;  %2494 = vmatprep.subr.mxu1 %v98_v3 }
  0x38   :  { %2491 = vmatprep.mubr.f32.mxu0 %v133_v6  ;;  %2495 = vmatpush3.msra.mxu1 %v98_v3  ;;  %v58_v3 = vld [vmem:[#allocation7] sm:$0xff] }
  0x39   :  { %2496 = vmatprep.mubr.f32.mxu1 %v133_v6  ;;  %2499 = vmatprep.subr.mxu0 %v2726_v20 }
  0x3a   :  { %2492 = vmatmul.mubr.f32.vlgmr.msra.gmra.mxu0 %v143_v7  ;;  %2497 = vmatmul.mubr.f32.vlgmr.msra.gmra.mxu1 %v143_v7 }
  0x3b   :  { %2504 = vmatprep.subr.mxu1 %v2726_v20  ;;  %2501 = vmatprep.mubr.msk.f32.mxu0 %vm2727_vm1, %v2726_v20 }
  0x3c   :  { %2506 = vmatprep.mubr.msk.f32.mxu1 %vm2727_vm1, %v2726_v20 }
  0xf2   :  { %v2473_v21 = vpop.f32.mrf.mxu0  ;;  %v2478_v22 = vpop.f32.mrf.mxu1 }
  0xf3   :  { %v232_v25 = vadd.f32 %v2478_v22, %v2473_v21 }
  0xf4   :  { %v139_v23 = vpop.f32.mrf.mxu0  ;;  %v225_v24 = vpop.f32.mrf.mxu1 }
  0xf5   :  { %v226_v28 = vadd.f32 %v225_v24, %v139_v23 }
  0xf6   :  { %v2483_v26 = vpop.f32.mrf.mxu0  ;;  %v2488_v27 = vpop.f32.mrf.mxu1 }
  0xf7   :  { %v313_v29 = vadd.f32 %v2483_v26, %v232_v25 }
  0xf8   :  { %v305_v30 = vpop.f32.mrf.mxu0  ;;  %v386_v31 = vpop.f32.mrf.mxu1 }
  0xf9   :  { %v395_v32 = vadd.f32 %v2488_v27, %v313_v29  ;;  %v306_v33 = vadd.f32 %v305_v30, %v226_v28 }
  0xfa   :  { %v2493_v34 = vpop.f32.mrf.mxu0  ;;  %v2498_v35 = vpop.f32.mrf.mxu1 }
  0xfb   :  { %v387_v36 = vadd.f32 %v386_v31, %v306_v33  ;;  %v475_v38 = vadd.f32 %v2493_v34, %v395_v32 }
  0xfc   :  { %v468_v37 = vpop.f32.mrf.mxu0  ;;  %v546_v40 = vpop.f32.mrf.mxu1 }
  0xfd   :  { %v469_v39 = vadd.f32 %v468_v37, %v387_v36  ;;  %v553_v42 = vadd.f32 %v2498_v35, %v475_v38 }
  0xff   :  { %v547_v41 = vadd.f32 %v546_v40, %v469_v39  ;;  %v2781_v45 = vand.u32 4294901760, %v553_v42 }
 0x101   :  { %v2774_v43 = vand.u32 4294901760, %v547_v41  ;;  %v2789_v48 = vsub.f32 %v553_v42, %v2781_v45 }
 0x103   :  { %v2777_v44 = vsub.f32 %v547_v41, %v2774_v43  ;;  %2500 = vmatpush3.xpose.msra.mxu0 %v2774_v43  ;;  %v2795_v50 = vand.u32 4294901760, %v2789_v48 }
 0x104   :  { %2509 = vmatprep.subr.mxu0 %v2726_v20 }
 0x105   :  { %v2784_v46 = vand.u32 4294901760, %v2777_v44  ;;  %v1071_v51 = vsub.f32 %v2789_v48, %v2795_v50 }
 0x107   :  { %v625_v47 = vsub.f32 %v2777_v44, %v2784_v46  ;;  %v2820_v52 = vand.u32 4294901760, %v1071_v51 }
 0x109   :  { %v626_v49 = vand.u32 4294901760, %v625_v47 }
 0x10b   :  { %2502 = vmatmul.mubr.f32.vlgmr.msra.gmra.mxu0 %v626_v49  ;;  %2505 = vmatpush3.xpose.msra.mxu1 %v626_v49 }
 0x10c   :  { %2510 = vmatpush3.xpose.msra.mxu0 %v2777_v44  ;;  %2511 = vmatprep.mubr.msk.f32.mxu0 %vm2727_vm1, %v2726_v20 }
 0x10d   :  { %2514 = vmatprep.subr.mxu1 %v2726_v20  ;;  %2519 = vmatprep.subr.mxu0 %v2726_v20 }
 0x10e   :  { %2507 = vmatmul.mubr.f32.vlgmr.msra.gmra.mxu1 %v2774_v43 }
 0x10f   :  { %2512 = vmatmul.mubr.f32.vlgmr.msra.gmra.mxu0 %v2777_v44  ;;  %2515 = vmatpush3.xpose.msra.mxu1 %v2774_v43 }
 0x110   :  { %2520 = vmatpush3.xpose.msra.mxu0 %v2784_v46  ;;  %2516 = vmatprep.mubr.msk.f32.mxu1 %vm2727_vm1, %v2726_v20 }
 0x111   :  { %2521 = vmatprep.mubr.msk.f32.mxu0 %vm2727_vm1, %v2726_v20  ;;  %2524 = vmatprep.subr.mxu1 %v2726_v20 }
 0x112   :  { %2517 = vmatmul.mubr.f32.vlgmr.msra.gmra.mxu1 %v2784_v46  ;;  %2529 = vmatprep.subr.mxu0 %v2726_v20 }
 0x113   :  { %2522 = vmatmul.mubr.f32.vlgmr.msra.gmra.mxu0 %v2774_v43  ;;  %2525 = vmatpush3.xpose.msra.mxu1 %v2774_v43 }
 0x114   :  { %2530 = vmatpush3.xpose.msra.mxu0 %v2781_v45  ;;  %2526 = vmatprep.mubr.msk.f32.mxu1 %vm2727_vm1, %v2726_v20 }
 0x115   :  { %2531 = vmatprep.mubr.msk.f32.mxu0 %vm2727_vm1, %v2726_v20  ;;  %2534 = vmatprep.subr.mxu1 %v2726_v20 }
 0x116   :  { %2527 = vmatmul.mubr.f32.vlgmr.msra.gmra.mxu1 %v2774_v43  ;;  %2539 = vmatprep.subr.mxu0 %v2726_v20 }
 0x117   :  { %2532 = vmatmul.mubr.f32.vlgmr.msra.gmra.mxu0 %v2820_v52  ;;  %2535 = vmatpush3.xpose.msra.mxu1 %v2820_v52 }
 0x118   :  { %2540 = vmatpush3.xpose.msra.mxu0 %v2789_v48  ;;  %2536 = vmatprep.mubr.msk.f32.mxu1 %vm2727_vm1, %v2726_v20 }
 0x119   :  { %2541 = vmatprep.mubr.msk.f32.mxu0 %vm2727_vm1, %v2726_v20  ;;  %2544 = vmatprep.subr.mxu1 %v2726_v20 }
 0x11a   :  { %2537 = vmatmul.mubr.f32.vlgmr.msra.gmra.mxu1 %v2781_v45  ;;  %2549 = vmatprep.subr.mxu0 %v2726_v20 }
 0x11b   :  { %2542 = vmatmul.mubr.f32.vlgmr.msra.gmra.mxu0 %v2789_v48  ;;  %2545 = vmatpush3.xpose.msra.mxu1 %v2781_v45 }
 0x11c   :  { %2550 = vmatpush3.xpose.msra.mxu0 %v2795_v50  ;;  %2546 = vmatprep.mubr.msk.f32.mxu1 %vm2727_vm1, %v2726_v20 }
 0x11d   :  { %2551 = vmatprep.mubr.msk.f32.mxu0 %vm2727_vm1, %v2726_v20  ;;  %2554 = vmatprep.subr.mxu1 %v2726_v20 }
 0x11e   :  { %2547 = vmatmul.mubr.f32.vlgmr.msra.gmra.mxu1 %v2795_v50  ;;  %2559 = vmatprep.subr.mxu0 %v2726_v20 }
 0x11f   :  { %2552 = vmatmul.mubr.f32.vlgmr.msra.gmra.mxu0 %v2781_v45  ;;  %2555 = vmatpush3.xpose.msra.mxu1 %v2781_v45 }
 0x120   :  { %2560 = vmatpush3.msra.mxu0 %v2774_v43  ;;  %2556 = vmatprep.mubr.msk.f32.mxu1 %vm2727_vm1, %v2726_v20 }
 0x121   :  { %2564 = vmatprep.subr.mxu1 %v2726_v20  ;;  %2561 = vmatprep.mubr.msk.f32.mxu0 %vm2727_vm1, %v2726_v20 }
 0x122   :  { %2557 = vmatmul.mubr.f32.vlgmr.msra.gmra.mxu1 %v2781_v45  ;;  %2569 = vmatprep.subr.mxu0 %v2726_v20 }
 0x123   :  { %2565 = vmatpush3.msra.mxu1 %v626_v49  ;;  %2566 = vmatprep.mubr.msk.f32.mxu1 %vm2727_vm1, %v2726_v20 }
 0x124   :  { %2574 = vmatprep.subr.mxu1 %v2726_v20 }
 0x1cb   :  { %v628_v53 = vpop.f32.mrf.mxu0 }
 0x1cd   :  { %v2503_v54 = vpop.f32.mrf.mxu0 }
 0x1ce   :  { %v704_v55 = vpop.f32.mrf.mxu1 }
 0x1cf   :  { %v705_v56 = vadd.f32 %v704_v55, %v628_v53  ;;  %v778_v57 = vpop.f32.mrf.mxu0 }
 0x1d0   :  { %v2508_v58 = vpop.f32.mrf.mxu1 }
 0x1d1   :  { %v779_v59 = vadd.f32 %v778_v57, %v705_v56  ;;  %v2513_v60 = vpop.f32.mrf.mxu0 }
 0x1d2   :  { %v852_v61 = vpop.f32.mrf.mxu1 }
 0x1d3   :  { %v853_v62 = vadd.f32 %v852_v61, %v779_v59  ;;  %v926_v63 = vpop.f32.mrf.mxu0 }
 0x1d4   :  { %v2518_v0 = vpop.f32.mrf.mxu1 }
 0x1d5   :  { %v927_v1 = vadd.f32 %v926_v63, %v853_v62  ;;  %v2523_v2 = vpop.f32.mrf.mxu0 }
 0x1d6   :  { %v998_v4 = vpop.f32.mrf.mxu1 }
 0x1d7   :  { %v999_v5 = vadd.f32 %v998_v4, %v927_v1  ;;  %v1074_v6 = vpop.f32.mrf.mxu0 }
 0x1d8   :  { %v2528_v7 = vpop.f32.mrf.mxu1 }
 0x1d9   :  { %v1448_v8 = vmul.f32 %v999_v5, %v58_v3  ;;  %v2533_v9 = vpop.f32.mrf.mxu0 }
 0x1da   :  { %v1150_v10 = vpop.f32.mrf.mxu1 }
 0x1db   :  { %v1151_v11 = vadd.f32 %v1150_v10, %v1074_v6  ;;  %v1224_v12 = vpop.f32.mrf.mxu0  ;;  %vm1450_vm2 = vcmp.eq.f32.partialorder %v1448_v8, 0.0 }
 0x1dc   :  { %v2538_v13 = vpop.f32.mrf.mxu1  ;;  %v1452_v14 = vsel %vm1450_vm2, -1e+16, %v1448_v8 }
 0x1dd   :  { %v1225_v15 = vadd.f32 %v1224_v12, %v1151_v11  ;;  %v2543_v16 = vpop.f32.mrf.mxu0  ;;  %v1454_v17 = vsel %vm60_vm0, %v1452_v14, -inf  ;;  %v2402_v13 = vld [vmem:[%s2913_s3] ss:$0 sm:$0xff]  ;;  %s2695_s3 = scalar_lea.vmem %s2390_s6, 256 }
 0x1de   :  { %v1298_v18 = vpop.f32.mrf.mxu1  ;;  %1455 = vmax.xlane.f32.xlu0 %v1454_v17  ;;  %p2696_p1 = scmp.ne.s32.totalorder %s2390_s6, %s2695_s3  ;;  %p2701_p3 = scmp.lt.s32.totalorder %s2695_s3, %s2695_s3 }
 0x1df   :  { %v1299_v19 = vadd.f32 %v1298_v18, %v1225_v15  ;;  %v1372_v21 = vpop.f32.mrf.mxu0 }
 0x1e0   :  { %v2548_v22 = vpop.f32.mrf.mxu1  ;;  %p2702_p4 = por %p2701_p3, %p2700_p2 }
 0x1e1   :  { %v1373_v23 = vadd.f32 %v1372_v21, %v1299_v19  ;;  %v2553_v24 = vpop.f32.mrf.mxu0 }
 0x1e2   :  { %v1444_v25 = vpop.f32.mrf.mxu1  ;;  %p2703_p5 = pnand %p2702_p4, %p2696_p1 }
 0x1e3   :  { %v1445_v26 = vadd.f32 %v1444_v25, %v1373_v23 }
 0x1e4   :  { %v2558_v27 = vpop.f32.mrf.mxu1 }
 0x1e5   :  { %v1449_v28 = vmul.f32 %v1445_v26, %v58_v3 }
 0x1e7   :  { %vm1451_vm3 = vcmp.eq.f32.partialorder %v1449_v28, 0.0 }
 0x1e8   :  { %v1453_v29 = vsel %vm1451_vm3, -1e+16, %v1449_v28 }
 0x1e9   :  { %v1457_v30 = vsel %vm60_vm0, %v1453_v29, -inf }
 0x1ea   :  { %1458 = vmax.xlane.f32.xlu0 %v1457_v30 }
 0x267   :  { %v1456_v31 = vpop.xlane.xlu0 %1455 }
 0x268   :  { %v1460_v32 = vsub.f32 %v1452_v14, %v1456_v31 }
 0x26a   :  { %v1462_v33 = vmul.f32 1.442695, %v1460_v32 }
 0x26c   :  { %2627 = vpow2.f32 %v1462_v33 }
 0x273   :  { %v1459_v34 = vpop.xlane.xlu0 %1458 }
 0x274   :  { %v1461_v35 = vsub.f32 %v1453_v29, %v1459_v34 }
 0x276   :  { %v1464_v36 = vmul.f32 1.442695, %v1461_v35 }
 0x278   :  { %2629 = vpow2.f32 %v1464_v36 }
 0x279   :  { %v2628_v37 = vpop.eup %2627 }
 0x27a   :  { %v1466_v38 = vsel %vm60_vm0, %v2628_v37, 0.0  ;;  %v1473_v39 = vsel %vm60_vm0, %v2628_v37, 0 }
 0x27b   :  { %1467 = vadd.xlane.f32.xlu1 %v1466_v38  ;;  %v1541_v40 = vand.u32 4294901760, %v1473_v39 }
 0x27d   :  { %v1542_v41 = vsub.f32 %v1473_v39, %v1541_v40  ;;  %2567 = vmatmul.mubr.f32.vlgmr.msra.gmra.mxu1 %v1541_v40 }
 0x27e   :  { %2575 = vmatpush3.msra.mxu1 %v2774_v43  ;;  %2576 = vmatprep.mubr.msk.f32.mxu1 %vm2727_vm1, %v2726_v20 }
 0x27f   :  { %2584 = vmatprep.subr.mxu1 %v2726_v20  ;;  %v1543_v42 = vand.u32 4294901760, %v1542_v41 }
 0x281   :  { %2577 = vmatmul.mubr.f32.vlgmr.msra.gmra.mxu1 %v1543_v42  ;;  %v1544_v47 = vsub.f32 %v1542_v41, %v1543_v42 }
 0x282   :  { %2585 = vmatpush3.msra.mxu1 %v2774_v43  ;;  %2586 = vmatprep.mubr.msk.f32.mxu1 %vm2727_vm1, %v2726_v20 }
 0x283   :  { %2594 = vmatprep.subr.mxu1 %v2726_v20  ;;  %v1545_v49 = vand.u32 4294901760, %v1544_v47 }
 0x285   :  { %v2630_v51 = vpop.eup %2629  ;;  %2562 = vmatmul.mubr.f32.vlgmr.msra.gmra.mxu0 %v1545_v49  ;;  %2587 = vmatmul.mubr.f32.vlgmr.msra.gmra.mxu1 %v1541_v40 }
 0x286   :  { %2570 = vmatpush3.msra.mxu0 %v2777_v44  ;;  %2595 = vmatpush3.msra.mxu1 %v2820_v52  ;;  %v1469_v53 = vsel %vm60_vm0, %v2630_v51, 0.0  ;;  %v1922_v54 = vsel %vm60_vm0, %v2630_v51, 0 }
 0x287   :  { %1470 = vadd.xlane.f32.xlu1 %v1469_v53  ;;  %2571 = vmatprep.mubr.msk.f32.mxu0 %vm2727_vm1, %v2726_v20  ;;  %v1990_v43 = vand.u32 4294901760, %v1922_v54 }
 0x288   :  { %2579 = vmatprep.subr.mxu0 %v2726_v20  ;;  %2596 = vmatprep.mubr.msk.f32.mxu1 %vm2727_vm1, %v2726_v20 }
 0x289   :  { %2604 = vmatprep.subr.mxu1 %v2726_v20  ;;  %2572 = vmatmul.mubr.f32.vlgmr.msra.gmra.mxu0 %v1542_v41  ;;  %v1991_v44 = vsub.f32 %v1922_v54, %v1990_v43 }
 0x28a   :  { %2580 = vmatpush3.msra.mxu0 %v2784_v46  ;;  %2597 = vmatmul.mubr.f32.vlgmr.msra.gmra.mxu1 %v1990_v43 }
 0x28b   :  { %2605 = vmatpush3.msra.mxu1 %v2781_v45  ;;  %2581 = vmatprep.mubr.msk.f32.mxu0 %vm2727_vm1, %v2726_v20  ;;  %v1992_v52 = vand.u32 4294901760, %v1991_v44 }
 0x28c   :  { %2589 = vmatprep.subr.mxu0 %v2726_v20  ;;  %2606 = vmatprep.mubr.msk.f32.mxu1 %vm2727_vm1, %v2726_v20 }
 0x28d   :  { %2614 = vmatprep.subr.mxu1 %v2726_v20  ;;  %2582 = vmatmul.mubr.f32.vlgmr.msra.gmra.mxu0 %v1541_v40  ;;  %v1993_v55 = vsub.f32 %v1991_v44, %v1992_v52 }
 0x28e   :  { %2590 = vmatpush3.msra.mxu0 %v2781_v45  ;;  %2607 = vmatmul.mubr.f32.vlgmr.msra.gmra.mxu1 %v1992_v52 }
 0x28f   :  { %2615 = vmatpush3.msra.mxu1 %v2781_v45  ;;  %2591 = vmatprep.mubr.msk.f32.mxu0 %vm2727_vm1, %v2726_v20  ;;  %v1994_v46 = vand.u32 4294901760, %v1993_v55 }
 0x290   :  { %2599 = vmatprep.subr.mxu0 %v2726_v20  ;;  %2616 = vmatprep.mubr.msk.f32.mxu1 %vm2727_vm1, %v2726_v20 }
 0x291   :  { %2592 = vmatmul.mubr.f32.vlgmr.msra.gmra.mxu0 %v1994_v46 }
 0x292   :  { %2600 = vmatpush3.msra.mxu0 %v2789_v48  ;;  %2617 = vmatmul.mubr.f32.vlgmr.msra.gmra.mxu1 %v1990_v43 }
 0x293   :  { %2601 = vmatprep.mubr.msk.f32.mxu0 %vm2727_vm1, %v2726_v20  ;;  %2609 = vmatprep.subr.mxu0 %v2726_v20 }
 0x295   :  { %2602 = vmatmul.mubr.f32.vlgmr.msra.gmra.mxu0 %v1991_v44 }
 0x296   :  { %2610 = vmatpush3.msra.mxu0 %v2795_v50  ;;  %2611 = vmatprep.mubr.msk.f32.mxu0 %vm2727_vm1, %v2726_v20 }
 0x299   :  { %2612 = vmatmul.mubr.f32.vlgmr.msra.gmra.mxu0 %v1990_v43 }
 0x304   :  { %v1468_v57 = vpop.xlane.xlu1 %1467 }
 0x305   :  { %2631 = vrcp.f32 %v1468_v57 }
 0x310   :  { %v1471_v5 = vpop.xlane.xlu1 %1470 }
 0x311   :  { %2633 = vrcp.f32 %v1471_v5 }
 0x312   :  { %v2632_v11 = vpop.eup %2631 }
 0x31e   :  { %v2634_v29 = vpop.eup %2633 }
 0x33d   :  { %v1623_v45 = vpop.f32.mrf.mxu1 }
 0x33f   :  { %v2568_v56 = vpop.f32.mrf.mxu1 }
 0x341   :  { %v1771_v58 = vpop.f32.mrf.mxu1 }
 0x343   :  { %v2578_v59 = vpop.f32.mrf.mxu1 }
 0x345   :  { %v1547_v48 = vpop.f32.mrf.mxu0  ;;  %v1917_v60 = vpop.f32.mrf.mxu1 }
 0x346   :  { %v1624_v63 = vadd.f32 %v1623_v45, %v1547_v48 }
 0x347   :  { %v2563_v61 = vpop.f32.mrf.mxu0  ;;  %v2588_v62 = vpop.f32.mrf.mxu1 }
 0x349   :  { %v1697_v0 = vpop.f32.mrf.mxu0 }
 0x34a   :  { %v1698_v1 = vadd.f32 %v1697_v0, %v1624_v63  ;;  %v2072_v2 = vpop.f32.mrf.mxu1 }
 0x34b   :  { %v2573_v3 = vpop.f32.mrf.mxu0 }
 0x34c   :  { %v2598_v50 = vpop.f32.mrf.mxu1  ;;  %v1772_v4 = vadd.f32 %v1771_v58, %v1698_v1 }
 0x34d   :  { %v1845_v20 = vpop.f32.mrf.mxu0 }
 0x34e   :  { %v1846_v6 = vadd.f32 %v1845_v20, %v1772_v4  ;;  %v2220_v7 = vpop.f32.mrf.mxu1 }
 0x34f   :  { %v2583_v8 = vpop.f32.mrf.mxu0 }
 0x350   :  { %v1918_v9 = vadd.f32 %v1917_v60, %v1846_v6  ;;  %v2608_v10 = vpop.f32.mrf.mxu1 }
 0x351   :  { %v1996_v12 = vpop.f32.mrf.mxu0 }
 0x352   :  { %v2371_v14 = vmul.f32 %v2632_v11, %v1918_v9  ;;  %v2366_v15 = vpop.f32.mrf.mxu1  ;;  %v2073_v17 = vadd.f32 %v2072_v2, %v1996_v12 }
 0x353   :  { %v2593_v16 = vpop.f32.mrf.mxu0 }
 0x354   :  { %v2618_v18 = vpop.f32.mrf.mxu1  ;;  %v2380_v19 = vadd.f32 %v2402_v13, %v2371_v14 }
 0x355   :  { %v2146_v21 = vpop.f32.mrf.mxu0 }
 0x356   :  { %v2147_v22 = vadd.f32 %v2146_v21, %v2073_v17  ;;  %2382 = vst [vmem:[#allocation8] sm:$0xff] %v2380_v19 }
 0x357   :  { %v2603_v23 = vpop.f32.mrf.mxu0 }
 0x358   :  { %v2221_v24 = vadd.f32 %v2220_v7, %v2147_v22 }
 0x359   :  { %v2294_v25 = vpop.f32.mrf.mxu0 }
 0x35a   :  { %v2295_v26 = vadd.f32 %v2294_v25, %v2221_v24 }
 0x35b   :  { %v2613_v27 = vpop.f32.mrf.mxu0 }
 0x35c   :  { %v2367_v28 = vadd.f32 %v2366_v15, %v2295_v26 }
 0x35e   :  { %v2373_v30 = vmul.f32 %v2634_v29, %v2367_v28 }
 0x360   :  { %v2381_v31 = vadd.f32 %v2402_v13, %v2373_v30 }
 0x362   :  { %2383 = vst [vmem:[#allocation8 + $0x8] sm:$0xff] %v2381_v31 }
 0x363   :  { %2706 = shalt.err (!%p2703_p5)
}
 0x364   :  { %2395 = dma.vmem_to_hbm [thread:$0]  %s2390_s6, 256, %s2914_s4, [#allocation4], %s2723_s23, %s2723_s23, %s2724_s24  }
 0x365   :  { %2719 = dma.done.wait [#allocation4], 256  }
 0x366   :  { %2720 = vsyncadd [#allocation4], 4294967040 }
 0x367   :  { %2399 = vsyncpa [#allocation3], 1 }
 0x368   :  { %2400 = vsyncpa [#allocation6], 1 }
 0x369   :  { %2401 = vsyncpa [#allocation4], 1 }

</bundles_post_ra>
